<compile_context>
chip_gen: v7x
topology: tpu7x:2x2x1
jax: 0.10.0
libtpu: 0.0.40
codegen_flags: <defaults>
</compile_context>

<pallas_src>
import functools

import jax
import jax.numpy as jnp
from jax.experimental import pallas as pl
from jax.experimental.pallas import tpu as pltpu


def _focal_loss_kernel(valid_ref, x_ref, t_ref, a_ref, o_ref, *, gamma, use_alpha):
    s = pl.program_id(1)

    # One (1,1,1) partial-sum block per batch row stays resident across the
    # "arbitrary" lane-tile axis; zero it on the first tile of each row.
    @pl.when(s == 0)
    def _():
        o_ref[...] = jnp.zeros_like(o_ref)

    x = x_ref[0].astype(jnp.float32)     # (C, TL): classes on sublanes, lanes dense
    t = t_ref[0]                         # (1, TL): int32 target classes
    c, tl = x.shape

    # log-softmax denominator over the class (sublane) axis.
    m = jnp.max(x, axis=0, keepdims=True)                               # (1, TL)
    lse = m + jnp.log(jnp.sum(jnp.exp(x - m), axis=0, keepdims=True))   # (1, TL)

    # Gather the target-class logit via a one-hot mask (no dynamic gather on TPU).
    cls = jax.lax.broadcasted_iota(jnp.int32, (c, tl), 0)
    onehot = (cls == t).astype(jnp.float32)                             # (C, TL)
    x_t = jnp.sum(x * onehot, axis=0, keepdims=True)                    # (1, TL)

    logpt = x_t - lse                                                   # (1, TL)
    pt = jnp.exp(logpt)

    if use_alpha:
        alpha = a_ref[0].astype(jnp.float32)                            # (C, 1)
        at = jnp.sum(alpha * onehot, axis=0, keepdims=True)             # (1, TL)
        logpt = logpt * at

    g = float(gamma)
    if g == 0.0:
        loss = -logpt
    else:
        omp = 1.0 - pt
        if g.is_integer() and 1.0 <= g <= 8.0:
            focal = omp
            for _ in range(int(g) - 1):                # repeated multiply, no pow
                focal = focal * omp
        else:
            focal = omp ** g                           # generic (EUP) path
        loss = -(focal * logpt)

    # Mask lanes past the valid spatial length (the ragged final tile holds
    # undefined data).  Mask AFTER the per-lane loss and BEFORE the reduction.
    lane = s * tl + jax.lax.broadcasted_iota(jnp.int32, (1, tl), 1)
    loss = jnp.where(lane < valid_ref[0], loss, 0.0)

    o_ref[0] += jnp.sum(loss, axis=1, keepdims=True)                    # (1, 1)


def focal_loss(logits, target, *, gamma=0.0, alpha=None, size_average=True,
               max_tile_lanes=8192, vmem_budget_bytes=24 << 20):
    """Pallas implementation of FocalLoss.forward.

    logits: (N, C) or (N, C, H, W) float array (PyTorch NCHW convention).
    target: integer class indices of shape (N,) / (N, H, W).
    """
    if logits.ndim > 2:
        n, c = logits.shape[0], logits.shape[1]
        x3 = logits.reshape(n, c, -1)                       # (N, C, HW) free reshape
        t3 = target.reshape(n, 1, -1).astype(jnp.int32)     # (N, 1, HW)
    else:
        c = logits.shape[1]
        # Small classification case: put N on lanes, C on sublanes.
        x3 = jnp.transpose(logits, (1, 0))[None]            # (1, C, N)
        t3 = target.reshape(1, 1, -1).astype(jnp.int32)     # (1, 1, N)
    b, _, l = x3.shape
    m_rows = b * l

    # alpha handling, mirroring the PyTorch module semantics.
    if alpha is None:
        use_alpha = False
        alpha_vec = jnp.ones((1, c, 1), jnp.float32)        # not read in-kernel
    else:
        use_alpha = True
        if isinstance(alpha, (float, int)):
            a = jnp.array([float(alpha), 1.0 - float(alpha)], jnp.float32)
        else:
            a = jnp.asarray(alpha, jnp.float32).reshape(-1)
        if a.shape[0] != c:
            raise ValueError(f"alpha has {a.shape[0]} entries but C={c}")
        alpha_vec = a.reshape(1, c, 1)

    # Lane-tile size: as large as possible subject to a VMEM budget that stays
    # safe on v7x (64 MiB physical / 32 MiB default scoped).  Double-buffered
    # f32 logits + i32 targets per lane.
    per_lane_bytes = (c + 1) * 4 * 2
    cap = max(128, (min(max_tile_lanes, vmem_budget_bytes // per_lane_bytes) // 128) * 128)
    tile_l = l if l <= cap else cap          # full-extent last dim is always legal
    num_s = pl.cdiv(l, tile_l)

    valid = jnp.array([l], jnp.int32)        # scalar-prefetch (SMEM) argument
    kernel = functools.partial(_focal_loss_kernel, gamma=float(gamma),
                               use_alpha=use_alpha)

    partials = pl.pallas_call(
        kernel,
        out_shape=jax.ShapeDtypeStruct((b, 1, 1), jnp.float32),
        grid_spec=pltpu.PrefetchScalarGridSpec(
            num_scalar_prefetch=1,
            grid=(b, num_s),
            in_specs=[
                pl.BlockSpec((1, c, tile_l), lambda n, s, _v: (n, 0, s)),  # logits
                pl.BlockSpec((1, 1, tile_l), lambda n, s, _v: (n, 0, s)),  # targets
                pl.BlockSpec((1, c, 1), lambda n, s, _v: (0, 0, 0)),       # alpha
            ],
            out_specs=pl.BlockSpec((1, 1, 1), lambda n, s, _v: (n, 0, 0)),
        ),
        compiler_params=pltpu.CompilerParams(
            dimension_semantics=("parallel", "arbitrary")),
    )(valid, x3, t3, alpha_vec)

    total = jnp.sum(partials)
    if size_average:
        return total / jnp.float32(m_rows)
    return total


def _reference_focal_loss(logits, target, *, gamma, alpha, size_average):
    """Plain-JAX reference mirroring the PyTorch module, for verification."""
    c = logits.shape[1]
    x = (jnp.transpose(logits, (0, 2, 3, 1)).reshape(-1, c)
         if logits.ndim > 2 else logits)
    t = target.reshape(-1)
    logp = jax.nn.log_softmax(x.astype(jnp.float32), axis=-1)
    logpt = jnp.take_along_axis(logp, t[:, None], axis=1)[:, 0]
    pt = jnp.exp(logpt)
    if alpha is not None:
        if isinstance(alpha, (float, int)):
            a_vec = jnp.array([float(alpha), 1.0 - float(alpha)], jnp.float32)
        else:
            a_vec = jnp.asarray(alpha, jnp.float32)
        logpt = logpt * a_vec[t]
    loss = -1.0 * (1.0 - pt) ** gamma * logpt
    return loss.mean() if size_average else loss.sum()


if __name__ == "__main__":
    key = jax.random.PRNGKey(0)
    k1, k2 = jax.random.split(key)

    # Small segmentation-style shapes.
    N, C, H, W = 2, 4, 16, 16
    logits = jax.random.normal(k1, (N, C, H, W), dtype=jnp.float32)
    target = jax.random.randint(k2, (N, H, W), 0, C, dtype=jnp.int32)

    gamma = 2.0
    alpha = [0.1, 0.2, 0.3, 0.4]   # per-class weights (len == C)

    out = focal_loss(logits, target, gamma=gamma, alpha=alpha, size_average=True)
    out = jax.block_until_ready(out)
    ref = _reference_focal_loss(logits, target, gamma=gamma, alpha=alpha,
                                size_average=True)
    assert jnp.allclose(out, ref, rtol=1e-5, atol=1e-5), (out, ref)

    # Also exercise the gamma==0 / alpha=None static fast paths (sum reduction).
    out0 = focal_loss(logits, target, gamma=0.0, alpha=None, size_average=False)
    out0 = jax.block_until_ready(out0)
    ref0 = _reference_focal_loss(logits, target, gamma=0.0, alpha=None,
                                 size_average=False)
    assert jnp.allclose(out0, ref0, rtol=1e-5, atol=1e-3), (out0, ref0)

    print("KERNEL_OK")
</pallas_src>

<mosaic_0001>
module attributes {stable_mosaic.version = 11 : i64} {
  func.func @_focal_loss_kernel(%arg0: i32, %arg1: i32, %arg2: memref<1xi32, #tpu.memory_space<smem>>, %arg3: memref<1x4x256xf32, #tpu.memory_space<vmem>>, %arg4: memref<1x1x256xi32, #tpu.memory_space<vmem>>, %arg5: memref<1x4x1xf32, #tpu.memory_space<vmem>>, %arg6: memref<1x1x1xf32, #tpu.memory_space<vmem>>) attributes {dimension_semantics = [#tpu.dimension_semantics<parallel>, #tpu.dimension_semantics<arbitrary>], iteration_bounds = array<i64: 2, 1>, scalar_prefetch = 1 : i64, scratch_operands = 0 : i64, tpu.core_type = #tpu.core_type<tc>, window_params = [{transform_indices = @transform_0, window_bounds = array<i64: 1, 4, 256>}, {transform_indices = @transform_1, window_bounds = array<i64: 1, 1, 256>}, {pipeline_mode = #tpu.pipeline_mode<synchronous>, transform_indices = @transform_2, window_bounds = array<i64: 1, 4, 1>}, {transform_indices = @transform_3, window_bounds = array<i64: 1, 1, 1>}]} {
    %c0_i32 = arith.constant 0 : i32
    %0 = arith.cmpi eq, %arg1, %c0_i32 : i32
    %1 = arith.extui %0 : i1 to i32
    %c0_i32_0 = arith.constant 0 : i32
    %2 = arith.cmpi ne, %1, %c0_i32_0 : i32
    scf.if %2 {
      %cst_23 = arith.constant 0.000000e+00 : f32
      %56 = vector.broadcast %cst_23 : f32 to vector<1x1x1xf32>
      %c0_24 = arith.constant 0 : index
      %c0_25 = arith.constant 0 : index
      %c0_26 = arith.constant 0 : index
      %57 = vector.load %arg6[%c0_24, %c0_25, %c0_26] : memref<1x1x1xf32, #tpu.memory_space<vmem>>, vector<1x1x1xf32>
      tpu.vector_store %arg6[%c0_24, %c0_25, %c0_26], %56 {strides = array<i32>} : memref<1x1x1xf32, #tpu.memory_space<vmem>>, vector<1x1x1xf32>,
    } else {
    }
    %c0 = arith.constant 0 : index
    %c0_1 = arith.constant 0 : index
    %c0_2 = arith.constant 0 : index
    %3 = vector.load %arg3[%c0, %c0_1, %c0_2] : memref<1x4x256xf32, #tpu.memory_space<vmem>>, vector<1x4x256xf32>
    %4 = vector.shape_cast %3 : vector<1x4x256xf32> to vector<4x256xf32>
    %c0_3 = arith.constant 0 : index
    %c0_4 = arith.constant 0 : index
    %c0_5 = arith.constant 0 : index
    %5 = vector.load %arg4[%c0_3, %c0_4, %c0_5] : memref<1x1x256xi32, #tpu.memory_space<vmem>>, vector<1x1x256xi32>
    %6 = vector.shape_cast %5 : vector<1x1x256xi32> to vector<1x256xi32>
    %cst = arith.constant dense<0xFF800000> : vector<256xf32>
    %7 = vector.multi_reduction <maximumf>, %4, %cst [0] : vector<4x256xf32> to vector<256xf32>
    %8 = vector.shape_cast %7 : vector<256xf32> to vector<1x256xf32>
    %9 = vector.broadcast %8 : vector<1x256xf32> to vector<4x256xf32>
    %10 = arith.subf %4, %9 : vector<4x256xf32>
    %11 = math.exp %10 : vector<4x256xf32>
    %cst_6 = arith.constant dense<0.000000e+00> : vector<256xf32>
    %12 = vector.multi_reduction <add>, %11, %cst_6 [0] : vector<4x256xf32> to vector<256xf32>
    %13 = vector.shape_cast %12 : vector<256xf32> to vector<1x256xf32>
    %14 = math.log %13 : vector<1x256xf32>
    %15 = arith.addf %8, %14 : vector<1x256xf32>
    %16 = tpu.iota {dimensions = array<i32: 0>} : vector<4x256xi32>
    %17 = vector.broadcast %6 : vector<1x256xi32> to vector<4x256xi32>
    %18 = arith.cmpi eq, %16, %17 : vector<4x256xi32>
    %19 = arith.extui %18 : vector<4x256xi1> to vector<4x256xi32>
    %20 = arith.sitofp %19 : vector<4x256xi32> to vector<4x256xf32>
    %21 = arith.mulf %4, %20 : vector<4x256xf32>
    %cst_7 = arith.constant dense<0.000000e+00> : vector<256xf32>
    %22 = vector.multi_reduction <add>, %21, %cst_7 [0] : vector<4x256xf32> to vector<256xf32>
    %23 = vector.shape_cast %22 : vector<256xf32> to vector<1x256xf32>
    %24 = arith.subf %23, %15 : vector<1x256xf32>
    %25 = math.exp %24 : vector<1x256xf32>
    %c0_8 = arith.constant 0 : index
    %c0_9 = arith.constant 0 : index
    %c0_10 = arith.constant 0 : index
    %26 = vector.load %arg5[%c0_8, %c0_9, %c0_10] : memref<1x4x1xf32, #tpu.memory_space<vmem>>, vector<1x4x1xf32>
    %27 = vector.shape_cast %26 : vector<1x4x1xf32> to vector<4x1xf32>
    %28 = vector.broadcast %27 : vector<4x1xf32> to vector<4x256xf32>
    %29 = arith.mulf %28, %20 : vector<4x256xf32>
    %cst_11 = arith.constant dense<0.000000e+00> : vector<256xf32>
    %30 = vector.multi_reduction <add>, %29, %cst_11 [0] : vector<4x256xf32> to vector<256xf32>
    %31 = vector.shape_cast %30 : vector<256xf32> to vector<1x256xf32>
    %32 = arith.mulf %24, %31 : vector<1x256xf32>
    %cst_12 = arith.constant 1.000000e+00 : f32
    %33 = vector.broadcast %cst_12 : f32 to vector<1x256xf32>
    %34 = arith.subf %33, %25 : vector<1x256xf32>
    %35 = arith.mulf %34, %34 : vector<1x256xf32>
    %36 = arith.mulf %35, %32 : vector<1x256xf32>
    %cst_13 = arith.constant 0.000000e+00 : f32
    %37 = vector.broadcast %cst_13 : f32 to vector<1x256xf32>
    %38 = arith.subf %37, %36 : vector<1x256xf32>
    %c256_i32 = arith.constant 256 : i32
    %39 = arith.muli %arg1, %c256_i32 : i32
    %40 = tpu.iota {dimensions = array<i32: 1>} : vector<1x256xi32>
    %41 = vector.broadcast %39 : i32 to vector<1x256xi32>
    %42 = arith.addi %41, %40 : vector<1x256xi32>
    %c0_14 = arith.constant 0 : index
    %43 = memref.load %arg2[%c0_14] : memref<1xi32, #tpu.memory_space<smem>>
    %44 = vector.broadcast %43 : i32 to vector<1x256xi32>
    %45 = arith.cmpi slt, %42, %44 : vector<1x256xi32>
    %cst_15 = arith.constant 0.000000e+00 : f32
    %46 = vector.broadcast %cst_15 : f32 to vector<1x256xf32>
    %47 = arith.select %45, %38, %46 : vector<1x256xi1>, vector<1x256xf32>
    %c0_16 = arith.constant 0 : index
    %c0_17 = arith.constant 0 : index
    %c0_18 = arith.constant 0 : index
    %48 = vector.load %arg6[%c0_16, %c0_17, %c0_18] : memref<1x1x1xf32, #tpu.memory_space<vmem>>, vector<1x1x1xf32>
    %49 = vector.shape_cast %48 : vector<1x1x1xf32> to vector<1x1xf32>
    %cst_19 = arith.constant dense<0.000000e+00> : vector<1xf32>
    %50 = vector.multi_reduction <add>, %47, %cst_19 [1] : vector<1x256xf32> to vector<1xf32>
    %51 = vector.shape_cast %50 : vector<1xf32> to vector<1x1xf32>
    %52 = arith.addf %49, %51 : vector<1x1xf32>
    %c0_20 = arith.constant 0 : index
    %c0_21 = arith.constant 0 : index
    %c0_22 = arith.constant 0 : index
    %53 = vector.load %arg6[%c0_20, %c0_21, %c0_22] : memref<1x1x1xf32, #tpu.memory_space<vmem>>, vector<1x1x1xf32>
    %54 = vector.shape_cast %53 : vector<1x1x1xf32> to vector<1x1xf32>
    %55 = vector.shape_cast %52 : vector<1x1xf32> to vector<1x1x1xf32>
    tpu.vector_store %arg6[%c0_20, %c0_21, %c0_22], %55 {strides = array<i32>} : memref<1x1x1xf32, #tpu.memory_space<vmem>>, vector<1x1x1xf32>,
    return
  }
  func.func @transform_0(%arg0: i32, %arg1: i32, %arg2: memref<1xi32, #tpu.memory_space<smem>>) -> (i32, i32, i32) {
    %c0_i32 = arith.constant 0 : i32
    %c0_i32_0 = arith.constant 0 : i32
    return %arg0, %c0_i32, %arg1 : i32, i32, i32
  }
  func.func @transform_1(%arg0: i32, %arg1: i32, %arg2: memref<1xi32, #tpu.memory_space<smem>>) -> (i32, i32, i32) {
    %c0_i32 = arith.constant 0 : i32
    %c0_i32_0 = arith.constant 0 : i32
    return %arg0, %c0_i32, %arg1 : i32, i32, i32
  }
  func.func @transform_2(%arg0: i32, %arg1: i32, %arg2: memref<1xi32, #tpu.memory_space<smem>>) -> (i32, i32, i32) {
    %c0_i32 = arith.constant 0 : i32
    %c0_i32_0 = arith.constant 0 : i32
    %c0_i32_1 = arith.constant 0 : i32
    %c0_i32_2 = arith.constant 0 : i32
    return %c0_i32, %c0_i32_0, %c0_i32_1 : i32, i32, i32
  }
  func.func @transform_3(%arg0: i32, %arg1: i32, %arg2: memref<1xi32, #tpu.memory_space<smem>>) -> (i32, i32, i32) {
    %c0_i32 = arith.constant 0 : i32
    %c0_i32_0 = arith.constant 0 : i32
    %c0_i32_1 = arith.constant 0 : i32
    return %arg0, %c0_i32, %c0_i32_0 : i32, i32, i32
  }
}

</mosaic_0001>

<bundles_post_ra>
// kernel: tpu_custom_call.1
= control target key start
LH: loop header
LB: loop body
LE: loop exit
PB: predicated region body
PF: predicated region fallthrough
CT: control target
= control target key end

     0   :  { %s827_s0 = inlined_call_operand.<no memory space> [shape: s32[1], index: 0, kind: input, shape index: {}]   ;;  %s828_s1 = inlined_call_operand.hbm [shape: f32[2,4,256], index: 1, kind: input, shape index: {}]   ;;  %s829_s2 = inlined_call_operand.vmem [shape: s32[2,1,256], index: 2, kind: input, shape index: {}]   ;;  %s830_s3 = inlined_call_operand.vmem [shape: f32[1,4,1], index: 3, kind: input, shape index: {}]   ;;  %s831_s4 = inlined_call_operand.vmem [shape: f32[2,1,1], index: 4, kind: output, shape index: {}]  }
   0x1   :  { %9 = sst [smem:[#allocation3]] %s827_s0 }
   0x2   :  { %10 = vsyncpa [#allocation5], 0 }
   0x3   :  { %12 = vsyncpa [#allocation5 + $0x1], 0  ;;  %s671_s17 = smov 0   ;;  %s673_s18 = smov 0  }
   0x4   :  { %s675_s19 = smov 0   ;;  %s677_s20 = smov 0  }
   0x5   :  { %s679_s21 = smov 0   ;;  %s681_s22 = smov 0  }
   0x6 LB: > { %s474_s0 = sadd.s32 4294967295, %s638_s22   ;;  %s30_s23 = sadd.s32 1, %s634_s21  ;;  %s638_s22 = sphi %s681_s22, %s18_s22   ;;  %s634_s21 = sphi %s679_s21, %s841_s21   ;;  %s630_s20 = sphi %s677_s20, %s840_s20   ;;  %s626_s19 = sphi %s675_s19, %s839_s19   ;;  %s622_s18 = sphi %s673_s18, %s838_s18   ;;  %s618_s17 = sphi %s671_s17, %s837_s17  }
   0x7   : > { %p32_p0 = scmp.ge.s32.totalorder %s30_s23, 2  ;;  %s39_s24 = sadd.s32 1, %s626_s19 }
   0x8   : > { %p46_p1 = scmp.ne.s32.totalorder %s626_s19, %s622_s18  ;;  %p47_p2 = scmp.eq.s32.totalorder %s638_s22, 0 }
   0x9   : > { %s843_s23 = smov (%p32_p0, %s30_s23), 0  ;;  %p52_p4 = scmp.ne.s32.totalorder %s622_s18, %s618_s17 }
   0xa   : > { %p707_p3 = por %p47_p2, %p46_p1  ;;  %s34_s26 = ssub.s32 %s634_s21, %s843_s23 }
   0xb   : > { %p53_p5 = scmp.eq.s32.totalorder %s474_s0, 0  ;;  %p37_p6 = scmp.eq.s32.totalorder %s34_s26, 0 }
   0xc   : > { %p495_p8 = scmp.lt.s32.totalorder %s638_s22, 2  ;;  %s154_s29 = sand.u32 1, %s626_s19  }
   0xd   : > { %p714_p7 = por %p53_p5, %p52_p4  ;;  %s488_s30 = sshll.u32 %s634_s21, 7 }
   0xe   : > { %s720_s28 = scalar_select %p37_p6, %s626_s19, %s39_s24  }
   0xf   : > { %s478_s5 = sshll.u32 %s154_s29, 3  ;;  %s727_s8 = scalar_lea.hbm %s828_s1, %s488_s30 }
  0x10   : > { %s158_s9 = scalar_lea.vmem [#allocation4], %s478_s5  ;;  %p731_p9 = pnand %p495_p8, %p707_p3 }
  0x11   : > { %s168_s10 = sshll.u32 %s158_s9, 4  ;;  %s155_s12 = scalar_lea.sflag [#allocation5], %s154_s29  ;;  %s735_s10 = int_to_ptr.vmem [resolvable:$true] %s168_s10 }
  0x12   : > { %s558_s13 = scalar_lea.hbm %s727_s8, 128  ;;  %p560_p13 = pneg %p731_p9 }
  0x13   : > { %p559_p12 = scmp.ne.s32.totalorder %s727_s8, %s558_s13  ;;  %s563_s16 = scalar_lea.hbm %s828_s1, 256 }
  0x14   : > { %p564_p2 = scmp.lt.u32.totalorder %s727_s8, %s828_s1  ;;  %p565_p3 = scmp.lt.u32.totalorder %s563_s16, %s558_s13 }
  0x15   : > { %p561_p0 = pnand %p560_p13, %p559_p12  ;;  %p567_p5 = scmp.lt.u32.totalorder %s558_s13, %s727_s8 }
  0x16   : > { %p566_p4 = por %p565_p3, %p564_p2 }
  0x17   : > { %p562_p1 = pneg %p561_p0 }
  0x18   : > { %p568_p6 = por %p567_p5, %p566_p4 }
  0x1a   : > { %p569_p8 = pnand %p568_p6, %p562_p1 }
  0x1c   : > { %572 = shalt.err (!%p569_p8)
}
  0x1d   : > { %s573_s24 = scalar_lea.vmem %s735_s10, 128  ;;  %s640_s25 = smov [#allocation4]  }
  0x1e   : > { %p574_p12 = scmp.ne.s32.totalorder %s735_s10, %s573_s24  ;;  %s578_s26 = sshll.u32 %s640_s25, 4  ;;  %s579_s26 = int_to_ptr.vmem [resolvable:$false] %s578_s26 }
  0x1f   : > { %s580_s29 = scalar_lea.vmem %s579_s26, 256  ;;  %p581_p11 = scmp.lt.s32.totalorder %s735_s10, %s579_s26 }
  0x20   : > { %p576_p0 = pnand %p574_p12, %p560_p13  ;;  %p582_p2 = scmp.lt.s32.totalorder %s580_s29, %s573_s24 }
  0x22   : > { %p577_p10 = pneg %p576_p0  ;;  %p583_p3 = por %p582_p2, %p581_p11 }
  0x24   : > { %p584_p4 = pnand %p583_p3, %p577_p10 }
  0x26   : > { %587 = shalt.err (!%p584_p4)
}
  0x27   : > { %494 = dma.hbm_to_vmem [thread:$0]  (!%p731_p9), %s727_s8, 128, %s735_s10, %s155_s12  }
  0x28   : > { %p835_p1 = scmp.lt.s32.totalorder %s638_s22, 3  ;;  %p836_p5 = scmp.ge.s32.totalorder %s638_s22, 1 }
  0x2a   : > { %p186_p13 = pnand %p836_p5, %p835_p1 }
  0x2b   : > { %s191_s30 = sand.u32 (!%p186_p13), 1, %s622_s18  }
  0x2c   : > { %189 = sbr.rel (%p186_p13) target bundleno = 351 (0x15f), region = 32  ;;  %s482_s5 = sshll.u32 (!%p186_p13), %s191_s30, 3 }
  0x2d   : > { %s192_s6 = scalar_lea.sflag (!%p186_p13), [#allocation5], %s191_s30  ;;  %s195_s7 = scalar_lea.vmem (!%p186_p13), [#allocation4], %s482_s5 }
  0x33   : > { %613 = dma.done.wait (%p714_p7), %s192_s6, 128  }
  0x34   : > { %615 = vsyncadd (%p714_p7), %s192_s6, 4294967168  ;;  %p226_p10 = scmp.lt.s32.totalorder %s630_s20, 1  ;;  %v293_v0 = vlaneseq  ;;  %v641_v1 = vmov 0   ;;  %v337_v5 = vld [vmem:[%s830_s3] sm:$0xf]  ;;  %v642_v9 = vmov 0.0  }
  0x35   : > { %546 = vset.pattern.permute.xlu0 %v641_v1  ;;  %v243_v13 = vld [vmem:[%s195_s7] sm:$0xff]  ;;  %vm248_vm2 = vcmask 1043456   ;;  %vm241_vm3 = vcmask 0  }
  0x36   : > { %s845_s20 = smov (!%p226_p10, %s630_s20), 1  ;;  %v294_v2 = vshrl.u32 %v293_v0, 7  ;;  %340 = vperm.xlu0 %546, %v337_v5   ;;  %v246_v14 = vcombine.high %v243_v13, %v243_v13  ;;  %v249_v15 = vsel %vm248_vm2, %v243_v13, -inf }
  0x37   : > { %s483_s8 = sshll.u32 %s845_s20, 1  ;;  %v250_v17 = vrot.slane %v249_v15, 4  ;;  %s793_s15 = scalar_lea.vmem %s831_s4, %s845_s20 }
  0x38   : > { %v297_v3 = vsub.s32 0, %v294_v2  ;;  %v301_v4 = vsub.s32 1, %v294_v2  ;;  %s232_s11 = scalar_lea.vmem %s829_s2, %s483_s8  ;;  %v256_v16 = vsel %vm248_vm2, %v246_v14, -inf  ;;  %242 = vst.msk [vmem:[%s793_s15] sm:$0x1] %vm241_vm3, %v642_v9  ;;  %s376_s20 = sld [smem:[#allocation3]] }
  0x39   : > { %v244_v6 = vld [vmem:[%s232_s11] sm:$0x3]  ;;  %v257_v18 = vrot.slane %v256_v16, 4  ;;  %v251_v19 = vmax.f32 %v249_v15, %v250_v17 }
  0x3a   : > { %v298_v7 = vrot.slane %v244_v6, %v297_v3  ;;  %v302_v8 = vrot.slane %v244_v6, %v301_v4 }
  0x3b   : > { %v258_v20 = vmax.f32 %v256_v16, %v257_v18  ;;  %v252_v21 = vrot.slane %v251_v19, 2 }
  0x3c   : > { %vm303_vm0 = vcmp.eq.s32.totalorder %v294_v2, %v298_v7  ;;  %vm304_vm1 = vcmp.eq.s32.totalorder %v294_v2, %v302_v8 }
  0x3d   : > { %v782_v10 = vsel %vm303_vm0, 1.0, %v642_v9  ;;  %v784_v11 = vsel %vm304_vm1, 1.0, %v642_v9  ;;  %v259_v22 = vrot.slane %v258_v20, 2  ;;  %v253_v23 = vmax.f32 %v251_v19, %v252_v21 }
  0x3e   : > { %v311_v12 = vcombine.low %v782_v10, %v784_v11 }
  0x3f   : > { %v260_v24 = vmax.f32 %v258_v20, %v259_v22  ;;  %v254_v25 = vrot.slane %v253_v23, 1 }
  0x40   : > { %v313_v42 = vmul.f32 %v311_v12, %v243_v13 }
  0x41   : > { %v261_v26 = vrot.slane %v260_v24, 1  ;;  %v255_v27 = vmax.f32 %v253_v23, %v254_v25 }
  0x42   : > { %v315_v45 = vcombine.high %v313_v42, %v313_v42  ;;  %v317_v48 = vsel %vm248_vm2, %v313_v42, 0.0 }
  0x43   : > { %v262_v28 = vmax.f32 %v260_v24, %v261_v26  ;;  %v318_v51 = vrot.slane %v317_v48, 4 }
  0x44   : > { %v324_v49 = vsel %vm248_vm2, %v315_v45, 0.0  ;;  %v382_v45 = vld [vmem:[%s793_s15] sm:$0x1] }
  0x45   : > { %v265_v29 = vcombine.low %v255_v27, %v262_v28  ;;  %v325_v53 = vrot.slane %v324_v49, 4  ;;  %v319_v54 = vadd.f32 %v318_v51, %v317_v48 }
  0x47   : > { %v267_v30 = vsub.f32 %v243_v13, %v265_v29  ;;  %v326_v55 = vadd.f32 %v325_v53, %v324_v49  ;;  %v320_v56 = vrot.slane %v319_v54, 2 }
  0x49   : > { %v268_v31 = vmul.f32 1.442695, %v267_v30  ;;  %v327_v57 = vrot.slane %v326_v55, 2  ;;  %v321_v58 = vadd.f32 %v320_v56, %v319_v54 }
  0x4b   : > { %548 = vpow2.f32 %v268_v31  ;;  %v328_v60 = vadd.f32 %v327_v57, %v326_v55  ;;  %v322_v62 = vrot.slane %v321_v58, 1 }
  0x4d   : > { %v329_v2 = vrot.slane %v328_v60, 1  ;;  %v323_v4 = vadd.f32 %v322_v62, %v321_v58 }
  0x4f   : > { %v330_v6 = vadd.f32 %v329_v2, %v328_v60 }
  0x55   : > { %v549_v32 = vpop.eup %548 }
  0x56   : > { %v271_v33 = vcombine.high %v549_v32, %v549_v32  ;;  %v273_v34 = vsel %vm248_vm2, %v549_v32, 0.0 }
  0x57   : > { %v274_v36 = vrot.slane %v273_v34, 4 }
  0x58   : > { %v280_v35 = vsel %vm248_vm2, %v271_v33, 0.0 }
  0x59   : > { %v281_v37 = vrot.slane %v280_v35, 4  ;;  %v275_v38 = vadd.f32 %v274_v36, %v273_v34 }
  0x5b   : > { %v282_v39 = vadd.f32 %v281_v37, %v280_v35  ;;  %v276_v40 = vrot.slane %v275_v38, 2 }
  0x5d   : > { %v283_v41 = vrot.slane %v282_v39, 2  ;;  %v277_v43 = vadd.f32 %v276_v40, %v275_v38  ;;  %v377_v38 = vstv %s376_s20 }
  0x5f   : > { %v284_v44 = vadd.f32 %v283_v41, %v282_v39  ;;  %v278_v46 = vrot.slane %v277_v43, 1 }
  0x61   : > { %v285_v47 = vrot.slane %v284_v44, 1  ;;  %v279_v50 = vadd.f32 %v278_v46, %v277_v43 }
  0x63   : > { %v286_v52 = vadd.f32 %v285_v47, %v284_v44  ;;  %550 = vlog2.f32 %v279_v50 }
  0x65   : > { %552 = vlog2.f32 %v286_v52 }
  0x6d   : > { %v551_v59 = vpop.eup %550 }
  0x6e   : > { %v288_v63 = vmul.f32 0.6931472, %v551_v59 }
  0x6f   : > { %v553_v61 = vpop.eup %552 }
  0x70   : > { %v290_v1 = vmul.f32 0.6931472, %v553_v61  ;;  %v291_v3 = vadd.f32 %v288_v63, %v255_v27 }
  0x72   : > { %v292_v5 = vadd.f32 %v290_v1, %v262_v28  ;;  %v331_v7 = vsub.f32 %v323_v4, %v291_v3 }
  0x74   : > { %v332_v8 = vsub.f32 %v330_v6, %v292_v5  ;;  %v333_v9 = vmul.f32 1.442695, %v331_v7 }
  0x76   : > { %v335_v12 = vmul.f32 1.442695, %v332_v8  ;;  %554 = vpow2.f32 %v333_v9 }
  0x78   : > { %556 = vpow2.f32 %v335_v12 }
  0x80   : > { %v555_v20 = vpop.eup %554 }
  0x81   : > { %v361_v28 = vsub.f32 1.0, %v555_v20 }
  0x82   : > { %v557_v23 = vpop.eup %556 }
  0x83   : > { %v362_v29 = vsub.f32 1.0, %v557_v23  ;;  %v363_v33 = vmul.f32 %v361_v28, %v361_v28 }
  0x85   : > { %v364_v34 = vmul.f32 %v362_v29, %v362_v29 }
  0xb5   : > { %v341_v13 = vpop.permute.xlu0 %340 }
  0xb6   : > { %v343_v14 = vmul.f32 %v782_v10, %v341_v13  ;;  %v344_v15 = vmul.f32 %v784_v11, %v341_v13  ;;  %v371_v10 = vand.u32 127, %v293_v0 }
  0xb8   : > { %v345_v16 = vsel %vm248_vm2, %v343_v14, 0.0  ;;  %v352_v17 = vsel %vm248_vm2, %v344_v15, 0.0  ;;  %v372_v35 = vadd.s32 128, %v371_v10  ;;  %vm378_vm4 = vcmp.lt.s32.totalorder %v371_v10, %v377_v38 }
  0xb9   : > { %v346_v18 = vrot.slane %v345_v16, 4  ;;  %v353_v19 = vrot.slane %v352_v17, 4 }
  0xba   : > { %vm379_vm5 = vcmp.lt.s32.totalorder %v372_v35, %v377_v38 }
  0xbb   : > { %v347_v21 = vadd.f32 %v346_v18, %v345_v16  ;;  %v354_v22 = vadd.f32 %v353_v19, %v352_v17 }
  0xbd   : > { %v348_v24 = vrot.slane %v347_v21, 2  ;;  %v355_v25 = vrot.slane %v354_v22, 2 }
  0xbf   : > { %v349_v26 = vadd.f32 %v348_v24, %v347_v21  ;;  %v356_v27 = vadd.f32 %v355_v25, %v354_v22 }
  0xc1   : > { %v350_v11 = vrot.slane %v349_v26, 1  ;;  %v357_v30 = vrot.slane %v356_v27, 1 }
  0xc3   : > { %v351_v31 = vadd.f32 %v350_v11, %v349_v26  ;;  %v358_v32 = vadd.f32 %v357_v30, %v356_v27 }
  0xc5   : > { %v359_v36 = vmul.f32 %v351_v31, %v331_v7  ;;  %v360_v37 = vmul.f32 %v358_v32, %v332_v8 }
  0xc7   : > { %v365_v39 = vmul.f32 %v363_v33, %v359_v36  ;;  %v366_v40 = vmul.f32 %v364_v34, %v360_v37 }
  0xc9   : > { %v367_v41 = vsub.f32 0.0, %v365_v39  ;;  %v368_v42 = vsub.f32 0.0, %v366_v40 }
  0xcb   : > { %v380_v43 = vsel %vm378_vm4, %v367_v41, 0.0  ;;  %v381_v0 = vsel %vm379_vm5, %v368_v42, 0.0 }
  0xcc   : > { %v383_v44 = vadd.f32 %v381_v0, %v380_v43 }
  0xce   : > { %384 = vadd.xlane.f32.xlu0 %v383_v44 }
 0x15b   : > { %v385_v46 = vpop.xlane.xlu0 %384 }
 0x15c   : > { %v386_v47 = vadd.f32 %v385_v46, %v382_v45 }
 0x15e   : > { %388 = vst.msk [vmem:[%s793_s15] sm:$0x1] %vm241_vm3, %v386_v47 }
 0x15f PF: > { %s18_s22 = sadd.s32 1, %s638_s22   ;;  %s837_s17 = smov %s622_s18 }
 0x160   : > { %p15_p7 = scmp.ge.s32.totalorder %s18_s22, 4   ;;  %s838_s18 = smov %s626_s19 }
 0x161   : > { %s839_s19 = smov %s720_s28  ;;  %s840_s20 = smov %s634_s21 }
 0x162   : > { %s841_s21 = smov %s843_s23  ;;  %17 = sbr.rel (!%p15_p7) target bundleno = 6 (0x6), region = 79 }
 0x169   :  { %406 = vsyncpa [#allocation5], 1 }
 0x16a   :  { %408 = vsyncpa [#allocation5 + $0x1], 1 }

</bundles_post_ra>
